<compile_context>
chip_gen: v7x
topology: tpu7x:2x2x1
jax: 0.10.0
libtpu: 0.0.40
codegen_flags: <defaults>
</compile_context>

<pallas_src>
import functools

import jax
import jax.numpy as jnp
from jax.experimental import pallas as pl
from jax.experimental.pallas import tpu as pltpu


def _round_up(x, mult):
    return ((x + mult - 1) // mult) * mult


def _cosface_kernel(label_ref, x_ref, w_ref, nll_ref, *, sm, n_valid, tile_n):
    """Per-tile CosFace negative log-likelihood.

    label_ref: (TILE_N, 1) int32   labels
    x_ref:     (TILE_N, E) f32     raw embeddings
    w_ref:     (E, C)      bf16    s * L2-normalized(weight).T (prepped in wrapper)
    nll_ref:   (TILE_N, 1) f32     per-row NLL (padded / ragged rows -> 0)
    """
    i = pl.program_id(0)

    x = x_ref[...].astype(jnp.float32)          # (TILE_N, E)
    lbl = label_ref[...]                        # (TILE_N, 1) int32

    # F.normalize(input): x / max(||x||, 1e-12) == x * rsqrt(max(||x||^2, 1e-24)).
    inv_norm = jax.lax.rsqrt(
        jnp.maximum(jnp.sum(x * x, axis=-1, keepdims=True), 1e-24))
    xn = (x * inv_norm).astype(jnp.bfloat16)    # bf16 feed for the MXU

    # cosine_s = s * cosine : (TILE_N, E) @ (E, C), native MXU layout, f32 acc.
    cosine_s = jnp.dot(xn, w_ref[...], preferred_element_type=jnp.float32)

    # One-hot mask of the label column; reused for margin and target-logit gather.
    col = jax.lax.broadcasted_iota(jnp.int32, cosine_s.shape, dimension=1)
    is_target = col == lbl                      # (TILE_N, C)

    # logits = s*(cosine - m*one_hot) == cosine_s with (s*m) subtracted at label col.
    logits = jnp.where(is_target, cosine_s - sm, cosine_s)

    # Numerically-stable per-row cross entropy: nll = logsumexp(logits) - logits[label].
    row_max = jnp.max(logits, axis=-1, keepdims=True)
    lse = jnp.log(jnp.sum(jnp.exp(logits - row_max), axis=-1, keepdims=True)) + row_max
    picked = jnp.sum(jnp.where(is_target, logits, 0.0), axis=-1, keepdims=True)
    nll = lse - picked                          # (TILE_N, 1)

    # Mask rows of the ragged final tile (their OOB writes are dropped anyway; the
    # mask keeps garbage/NaN from a partially-filled block out of the stored slab).
    row = i * tile_n + jax.lax.broadcasted_iota(jnp.int32, nll.shape, dimension=0)
    nll_ref[...] = jnp.where(row < n_valid, nll, 0.0)


def _vmem_estimate(tile_n, e, c):
    w_bytes = e * c * 2                 # bf16 weight, single-buffered resident block
    x_bytes = 2 * tile_n * e * 4        # double-buffered embeddings tile
    lbl_bytes = 2 * tile_n * 4          # double-buffered label column
    out_bytes = 2 * tile_n * 4          # double-buffered output column
    interm = 8 * tile_n * c * 4         # generous bound on live (TILE_N, C) f32 temps
    return w_bytes + x_bytes + lbl_bytes + out_bytes + interm


def cosface_loss(embeddings, weight, label, *, s=30.0, m=0.4, tile_n_max=256):
    """embeddings: (N, E) f32, weight: (C, E) f32, label: (N,) int -> scalar f32."""
    n, e = embeddings.shape
    c, e_w = weight.shape
    assert e == e_w

    # ---- Hoisted weight prep (runs once, outside the kernel) --------------------
    # F.normalize(weight), fold the scale s, transpose to MXU-native (E, C), bf16.
    w32 = weight.astype(jnp.float32)
    w_inv = jax.lax.rsqrt(
        jnp.maximum(jnp.sum(w32 * w32, axis=1, keepdims=True), 1e-24))
    wns_t = (s * (w32 * w_inv)).T.astype(jnp.bfloat16)        # (E, C)

    # ---- Batch tiling: no padding of the (N, E) input; ragged tail is masked ----
    vmem_target = 40 * 1024 * 1024
    tile_n = min(tile_n_max, _round_up(n, 8))
    while tile_n > 8 and _vmem_estimate(tile_n, e, c) > vmem_target:
        tile_n = _round_up(tile_n // 2, 8)
    grid = (pl.cdiv(n, tile_n),)

    vmem_limit = min(48 * 1024 * 1024,
                     max(32 * 1024 * 1024, int(_vmem_estimate(tile_n, e, c) * 1.5)))

    label2d = label.astype(jnp.int32).reshape(n, 1)

    kernel = functools.partial(_cosface_kernel, sm=float(s) * float(m),
                               n_valid=n, tile_n=tile_n)

    def _run(w_spec):
        return pl.pallas_call(
            kernel,
            out_shape=jax.ShapeDtypeStruct((n, 1), jnp.float32),
            grid=grid,
            in_specs=[
                pl.BlockSpec((tile_n, 1), lambda i: (i, 0)),   # labels
                pl.BlockSpec((tile_n, e), lambda i: (i, 0)),   # embeddings
                w_spec,                                        # resident weight (E, C)
            ],
            out_specs=pl.BlockSpec((tile_n, 1), lambda i: (i, 0)),
            compiler_params=pltpu.CompilerParams(
                dimension_semantics=("parallel",),
                vmem_limit_bytes=vmem_limit,
            ),
            cost_estimate=pl.CostEstimate(
                flops=2 * n * c * e + 8 * n * c + 4 * n * e,
                transcendentals=n * c + 2 * n,
                bytes_accessed=n * e * 4 + e * c * 2 + n * 4 + n * 4,
            ),
        )(label2d, embeddings, wns_t)

    # Prefer a single-buffered constant weight block (halves the largest resident
    # allocation); fall back to default buffering if this Pallas build rejects it.
    try:
        nll = _run(pl.BlockSpec((e, c), lambda i: (0, 0),
                                pipeline_mode=pl.Buffered(1)))
    except Exception:
        nll = _run(pl.BlockSpec((e, c), lambda i: (0, 0)))

    # Mean NLL over the true batch (ragged-tile rows were zeroed / dropped).
    return jnp.sum(nll) / n


if __name__ == "__main__":
    key = jax.random.PRNGKey(0)
    k_x, k_w, k_lbl = jax.random.split(key, 3)

    # Small shapes consistent with the module: batch=8, embedding_size=32, class_num=16.
    N, E, C = 8, 32, 16
    S, M = 30.0, 0.4

    x = jax.random.normal(k_x, (N, E), dtype=jnp.float32)
    # Stands in for nn.init.xavier_uniform_ on a (C, E) weight.
    limit = (6.0 / (C + E)) ** 0.5
    weight = jax.random.uniform(k_w, (C, E), jnp.float32, -limit, limit)
    label = jax.random.randint(k_lbl, (N,), 0, C, dtype=jnp.int32)

    loss = cosface_loss(x, weight, label, s=S, m=M)
    jax.block_until_ready(loss)

    # --- Reference 1: pure-JAX forward on the same bf16-MXU precision path -------
    xn32 = x * jax.lax.rsqrt(jnp.maximum(jnp.sum(x * x, axis=1, keepdims=True), 1e-24))
    wn32 = weight * jax.lax.rsqrt(
        jnp.maximum(jnp.sum(weight * weight, axis=1, keepdims=True), 1e-24))
    cos_s = jnp.dot(xn32.astype(jnp.bfloat16), (S * wn32).T.astype(jnp.bfloat16),
                    preferred_element_type=jnp.float32)
    logits_bf = cos_s - S * M * jax.nn.one_hot(label, C, dtype=jnp.float32)
    ref_bf16 = -jnp.mean(jax.nn.log_softmax(logits_bf, axis=-1)[jnp.arange(N), label])
    assert jnp.allclose(loss, ref_bf16, rtol=1e-3, atol=5e-3), (loss, ref_bf16)

    # --- Reference 2: full-f32 PyTorch-equivalent forward (gross-error guard) ----
    cos32 = xn32 @ wn32.T
    logits32 = S * (cos32 - M * jax.nn.one_hot(label, C, dtype=jnp.float32))
    ref_f32 = -jnp.mean(jax.nn.log_softmax(logits32, axis=-1)[jnp.arange(N), label])
    assert jnp.allclose(loss, ref_f32, rtol=0.0, atol=0.25), (loss, ref_f32)

    print("KERNEL_OK")
</pallas_src>

<mosaic_0001>
module attributes {stable_mosaic.version = 11 : i64} {
  func.func @_cosface_kernel(%arg0: i32, %arg1: memref<8x1xi32, #tpu.memory_space<vmem>>, %arg2: memref<8x32xf32, #tpu.memory_space<vmem>>, %arg3: memref<32x16xbf16, #tpu.memory_space<vmem>>, %arg4: memref<8x1xf32, #tpu.memory_space<vmem>>) attributes {dimension_semantics = [#tpu.dimension_semantics<parallel>], iteration_bounds = array<i64: 1>, scalar_prefetch = 0 : i64, scratch_operands = 0 : i64, tpu.core_type = #tpu.core_type<tc>, window_params = [{transform_indices = @transform_0, window_bounds = array<i64: 8, 1>}, {transform_indices = @transform_1, window_bounds = array<i64: 8, 32>}, {pipeline_mode = #tpu.pipeline_mode<synchronous>, transform_indices = @transform_2, window_bounds = array<i64: 32, 16>}, {transform_indices = @transform_3, window_bounds = array<i64: 8, 1>}]} {
    %c0 = arith.constant 0 : index
    %c0_0 = arith.constant 0 : index
    %0 = vector.load %arg2[%c0, %c0_0] : memref<8x32xf32, #tpu.memory_space<vmem>>, vector<8x32xf32>
    %c0_1 = arith.constant 0 : index
    %c0_2 = arith.constant 0 : index
    %1 = vector.load %arg1[%c0_1, %c0_2] : memref<8x1xi32, #tpu.memory_space<vmem>>, vector<8x1xi32>
    %2 = arith.mulf %0, %0 : vector<8x32xf32>
    %cst = arith.constant dense<0.000000e+00> : vector<8xf32>
    %3 = vector.multi_reduction <add>, %2, %cst [1] : vector<8x32xf32> to vector<8xf32>
    %4 = vector.shape_cast %3 : vector<8xf32> to vector<8x1xf32>
    %cst_3 = arith.constant 1.000000e-24 : f32
    %5 = vector.broadcast %cst_3 : f32 to vector<8x1xf32>
    %6 = arith.maximumf %4, %5 : vector<8x1xf32>
    %7 = math.rsqrt %6 : vector<8x1xf32>
    %8 = vector.broadcast %7 : vector<8x1xf32> to vector<8x32xf32>
    %9 = arith.mulf %0, %8 : vector<8x32xf32>
    %10 = arith.truncf %9 : vector<8x32xf32> to vector<8x32xbf16>
    %c0_4 = arith.constant 0 : index
    %c0_5 = arith.constant 0 : index
    %11 = vector.load %arg3[%c0_4, %c0_5] : memref<32x16xbf16, #tpu.memory_space<vmem>>, vector<32x16xbf16>
    %cst_6 = arith.constant dense<0.000000e+00> : vector<8x16xf32>
    %12 = tpu.matmul %10, %11, %cst_6 {dimension_numbers = #tpu.dot_dimension_numbers<[1], [0], [0], [1], [0, 0, 1, 1], [], []>} : vector<8x32xbf16>, vector<32x16xbf16>, vector<8x16xf32> -> vector<8x16xf32>
    %13 = tpu.iota {dimensions = array<i32: 1>} : vector<8x16xi32>
    %14 = vector.broadcast %1 : vector<8x1xi32> to vector<8x16xi32>
    %15 = arith.cmpi eq, %13, %14 : vector<8x16xi32>
    %cst_7 = arith.constant 1.200000e+01 : f32
    %16 = vector.broadcast %cst_7 : f32 to vector<8x16xf32>
    %17 = arith.subf %12, %16 : vector<8x16xf32>
    %18 = arith.select %15, %17, %12 : vector<8x16xi1>, vector<8x16xf32>
    %cst_8 = arith.constant dense<0xFF800000> : vector<8xf32>
    %19 = vector.multi_reduction <maximumf>, %18, %cst_8 [1] : vector<8x16xf32> to vector<8xf32>
    %20 = vector.shape_cast %19 : vector<8xf32> to vector<8x1xf32>
    %21 = vector.broadcast %20 : vector<8x1xf32> to vector<8x16xf32>
    %22 = arith.subf %18, %21 : vector<8x16xf32>
    %23 = math.exp %22 : vector<8x16xf32>
    %cst_9 = arith.constant dense<0.000000e+00> : vector<8xf32>
    %24 = vector.multi_reduction <add>, %23, %cst_9 [1] : vector<8x16xf32> to vector<8xf32>
    %25 = vector.shape_cast %24 : vector<8xf32> to vector<8x1xf32>
    %26 = math.log %25 : vector<8x1xf32>
    %27 = arith.addf %26, %20 : vector<8x1xf32>
    %cst_10 = arith.constant 0.000000e+00 : f32
    %28 = vector.broadcast %cst_10 : f32 to vector<8x16xf32>
    %29 = arith.select %15, %18, %28 : vector<8x16xi1>, vector<8x16xf32>
    %cst_11 = arith.constant dense<0.000000e+00> : vector<8xf32>
    %30 = vector.multi_reduction <add>, %29, %cst_11 [1] : vector<8x16xf32> to vector<8xf32>
    %31 = vector.shape_cast %30 : vector<8xf32> to vector<8x1xf32>
    %32 = arith.subf %27, %31 : vector<8x1xf32>
    %c8_i32 = arith.constant 8 : i32
    %33 = arith.muli %arg0, %c8_i32 : i32
    %34 = tpu.iota {dimensions = array<i32: 0>} : vector<8x1xi32>
    %35 = vector.broadcast %33 : i32 to vector<8x1xi32>
    %36 = arith.addi %35, %34 : vector<8x1xi32>
    %c8_i32_12 = arith.constant 8 : i32
    %37 = vector.broadcast %c8_i32_12 : i32 to vector<8x1xi32>
    %38 = arith.cmpi slt, %36, %37 : vector<8x1xi32>
    %cst_13 = arith.constant 0.000000e+00 : f32
    %39 = vector.broadcast %cst_13 : f32 to vector<8x1xf32>
    %40 = arith.select %38, %32, %39 : vector<8x1xi1>, vector<8x1xf32>
    %c0_14 = arith.constant 0 : index
    %c0_15 = arith.constant 0 : index
    %41 = vector.load %arg4[%c0_14, %c0_15] : memref<8x1xf32, #tpu.memory_space<vmem>>, vector<8x1xf32>
    tpu.vector_store %arg4[%c0_14, %c0_15], %40 {strides = array<i32>} : memref<8x1xf32, #tpu.memory_space<vmem>>, vector<8x1xf32>,
    return
  }
  func.func @transform_0(%arg0: i32) -> (i32, i32) {
    %c0_i32 = arith.constant 0 : i32
    %c0_i32_0 = arith.constant 0 : i32
    return %arg0, %c0_i32 : i32, i32
  }
  func.func @transform_1(%arg0: i32) -> (i32, i32) {
    %c0_i32 = arith.constant 0 : i32
    %c0_i32_0 = arith.constant 0 : i32
    return %arg0, %c0_i32 : i32, i32
  }
  func.func @transform_2(%arg0: i32) -> (i32, i32) {
    %c0_i32 = arith.constant 0 : i32
    %c0_i32_0 = arith.constant 0 : i32
    %c0_i32_1 = arith.constant 0 : i32
    return %c0_i32, %c0_i32_0 : i32, i32
  }
  func.func @transform_3(%arg0: i32) -> (i32, i32) {
    %c0_i32 = arith.constant 0 : i32
    %c0_i32_0 = arith.constant 0 : i32
    return %arg0, %c0_i32 : i32, i32
  }
}

module attributes {stable_mosaic.version = 11 : i64} {
  func.func @_cosface_kernel(%arg0: i32, %arg1: memref<8x1xi32, #tpu.memory_space<vmem>>, %arg2: memref<8x32xf32, #tpu.memory_space<vmem>>, %arg3: memref<32x16xbf16, #tpu.memory_space<vmem>>, %arg4: memref<8x1xf32, #tpu.memory_space<vmem>>) attributes {dimension_semantics = [#tpu.dimension_semantics<parallel>], iteration_bounds = array<i64: 1>, scalar_prefetch = 0 : i64, scratch_operands = 0 : i64, tpu.core_type = #tpu.core_type<tc>, window_params = [{transform_indices = @transform_0, window_bounds = array<i64: 8, 1>}, {transform_indices = @transform_1, window_bounds = array<i64: 8, 32>}, {pipeline_mode = #tpu.pipeline_mode<synchronous>, transform_indices = @transform_2, window_bounds = array<i64: 32, 16>}, {transform_indices = @transform_3, window_bounds = array<i64: 8, 1>}]} {
    %c0 = arith.constant 0 : index
    %c0_0 = arith.constant 0 : index
    %0 = vector.load %arg2[%c0, %c0_0] : memref<8x32xf32, #tpu.memory_space<vmem>>, vector<8x32xf32>
    %c0_1 = arith.constant 0 : index
    %c0_2 = arith.constant 0 : index
    %1 = vector.load %arg1[%c0_1, %c0_2] : memref<8x1xi32, #tpu.memory_space<vmem>>, vector<8x1xi32>
    %2 = arith.mulf %0, %0 : vector<8x32xf32>
    %cst = arith.constant dense<0.000000e+00> : vector<8xf32>
    %3 = vector.multi_reduction <add>, %2, %cst [1] : vector<8x32xf32> to vector<8xf32>
    %4 = vector.shape_cast %3 : vector<8xf32> to vector<8x1xf32>
    %cst_3 = arith.constant 1.000000e-24 : f32
    %5 = vector.broadcast %cst_3 : f32 to vector<8x1xf32>
    %6 = arith.maximumf %4, %5 : vector<8x1xf32>
    %7 = math.rsqrt %6 : vector<8x1xf32>
    %8 = vector.broadcast %7 : vector<8x1xf32> to vector<8x32xf32>
    %9 = arith.mulf %0, %8 : vector<8x32xf32>
    %10 = arith.truncf %9 : vector<8x32xf32> to vector<8x32xbf16>
    %c0_4 = arith.constant 0 : index
    %c0_5 = arith.constant 0 : index
    %11 = vector.load %arg3[%c0_4, %c0_5] : memref<32x16xbf16, #tpu.memory_space<vmem>>, vector<32x16xbf16>
    %cst_6 = arith.constant dense<0.000000e+00> : vector<8x16xf32>
    %12 = tpu.matmul %10, %11, %cst_6 {dimension_numbers = #tpu.dot_dimension_numbers<[1], [0], [0], [1], [0, 0, 1, 1], [], []>} : vector<8x32xbf16>, vector<32x16xbf16>, vector<8x16xf32> -> vector<8x16xf32>
    %13 = tpu.iota {dimensions = array<i32: 1>} : vector<8x16xi32>
    %14 = vector.broadcast %1 : vector<8x1xi32> to vector<8x16xi32>
    %15 = arith.cmpi eq, %13, %14 : vector<8x16xi32>
    %cst_7 = arith.constant 1.200000e+01 : f32
    %16 = vector.broadcast %cst_7 : f32 to vector<8x16xf32>
    %17 = arith.subf %12, %16 : vector<8x16xf32>
    %18 = arith.select %15, %17, %12 : vector<8x16xi1>, vector<8x16xf32>
    %cst_8 = arith.constant dense<0xFF800000> : vector<8xf32>
    %19 = vector.multi_reduction <maximumf>, %18, %cst_8 [1] : vector<8x16xf32> to vector<8xf32>
    %20 = vector.shape_cast %19 : vector<8xf32> to vector<8x1xf32>
    %21 = vector.broadcast %20 : vector<8x1xf32> to vector<8x16xf32>
    %22 = arith.subf %18, %21 : vector<8x16xf32>
    %23 = math.exp %22 : vector<8x16xf32>
    %cst_9 = arith.constant dense<0.000000e+00> : vector<8xf32>
    %24 = vector.multi_reduction <add>, %23, %cst_9 [1] : vector<8x16xf32> to vector<8xf32>
    %25 = vector.shape_cast %24 : vector<8xf32> to vector<8x1xf32>
    %26 = math.log %25 : vector<8x1xf32>
    %27 = arith.addf %26, %20 : vector<8x1xf32>
    %cst_10 = arith.constant 0.000000e+00 : f32
    %28 = vector.broadcast %cst_10 : f32 to vector<8x16xf32>
    %29 = arith.select %15, %18, %28 : vector<8x16xi1>, vector<8x16xf32>
    %cst_11 = arith.constant dense<0.000000e+00> : vector<8xf32>
    %30 = vector.multi_reduction <add>, %29, %cst_11 [1] : vector<8x16xf32> to vector<8xf32>
    %31 = vector.shape_cast %30 : vector<8xf32> to vector<8x1xf32>
    %32 = arith.subf %27, %31 : vector<8x1xf32>
    %c8_i32 = arith.constant 8 : i32
    %33 = arith.muli %arg0, %c8_i32 : i32
    %34 = tpu.iota {dimensions = array<i32: 0>} : vector<8x1xi32>
    %35 = vector.broadcast %33 : i32 to vector<8x1xi32>
    %36 = arith.addi %35, %34 : vector<8x1xi32>
    %c8_i32_12 = arith.constant 8 : i32
    %37 = vector.broadcast %c8_i32_12 : i32 to vector<8x1xi32>
    %38 = arith.cmpi slt, %36, %37 : vector<8x1xi32>
    %cst_13 = arith.constant 0.000000e+00 : f32
    %39 = vector.broadcast %cst_13 : f32 to vector<8x1xf32>
    %40 = arith.select %38, %32, %39 : vector<8x1xi1>, vector<8x1xf32>
    %c0_14 = arith.constant 0 : index
    %c0_15 = arith.constant 0 : index
    %41 = vector.load %arg4[%c0_14, %c0_15] : memref<8x1xf32, #tpu.memory_space<vmem>>, vector<8x1xf32>
    tpu.vector_store %arg4[%c0_14, %c0_15], %40 {strides = array<i32>} : memref<8x1xf32, #tpu.memory_space<vmem>>, vector<8x1xf32>,
    return
  }
  func.func @transform_0(%arg0: i32) -> (i32, i32) {
    %c0_i32 = arith.constant 0 : i32
    %c0_i32_0 = arith.constant 0 : i32
    return %arg0, %c0_i32 : i32, i32
  }
  func.func @transform_1(%arg0: i32) -> (i32, i32) {
    %c0_i32 = arith.constant 0 : i32
    %c0_i32_0 = arith.constant 0 : i32
    return %arg0, %c0_i32 : i32, i32
  }
  func.func @transform_2(%arg0: i32) -> (i32, i32) {
    %c0_i32 = arith.constant 0 : i32
    %c0_i32_0 = arith.constant 0 : i32
    %c0_i32_1 = arith.constant 0 : i32
    return %c0_i32, %c0_i32_0 : i32, i32
  }
  func.func @transform_3(%arg0: i32) -> (i32, i32) {
    %c0_i32 = arith.constant 0 : i32
    %c0_i32_0 = arith.constant 0 : i32
    return %arg0, %c0_i32 : i32, i32
  }
}

</mosaic_0001>

<bundles_post_ra>
// kernel: tpu_custom_call.1
= control target key start
LH: loop header
LB: loop body
LE: loop exit
PB: predicated region body
PF: predicated region fallthrough
CT: control target
= control target key end

     0   :  { %vm18_vm0 = vcmask 261120   ;;  %v151_v3 = vmov 0.0   ;;  %vm152_vm1 = vmmov 0   ;;  %v153_v6 = vmov 0   ;;  %s191_s1 = inlined_call_operand.vmem [shape: f32[8,32], index: 1, kind: input, shape index: {}]   ;;  %s192_s2 = inlined_call_operand.vmem [shape: bf16[32,16], index: 2, kind: input, shape index: {}]   ;;  %s193_s0 = inlined_call_operand.vmem [shape: s32[8,1], index: 0, kind: input, shape index: {}]   ;;  %s194_s3 = inlined_call_operand.vmem [shape: f32[8,1], index: 3, kind: output, shape index: {}]  }
   0x1   :  { %v15_v0 = vld [vmem:[%s191_s1] sm:$0xff]  ;;  %131 = vmatprep.subr.bf16.mxu0 %v151_v3  ;;  %135 = vmatprep.mubr.msk.bf16.mxu0 %vm152_vm1, %v151_v3  ;;  %v144_v5 = vld [vmem:[%s192_s2 + $0x8] sm:$0xff]   ;;  %v85_v13 = vlaneseq  ;;  %vm93_vm3 = vcmask 130048   ;;  %vm118_vm4 = vcmask 7168  }
   0x2   :  { %v17_v1 = vmul.f32 %v15_v0, %v15_v0  ;;  %v143_v4 = vld [vmem:[%s192_s2] sm:$0xff]   ;;  %142 = vset.pattern.permute.xlu0 %v153_v6 }
   0x3   :  { %132 = vmatpush3.bf16.msra.mxu0 %v143_v4  ;;  %v16_v7 = vld [vmem:[%s193_s0] sm:$0xff]  ;;  %v86_v14 = vand.u32 127, %v85_v13 }
   0x4   :  { %v19_v2 = vsel %vm18_vm0, %v17_v1, 0.0  ;;  %133 = vmatprep.subr.bf16.mxu0 %v151_v3 }
   0x5   :  { %20 = vadd.xlane.f32.xlu0 %v19_v2 }
   0x7   :  { %134 = vmatpush3.bf16.msra.mxu0 %v144_v5 }
  0x1b   :  { %88 = vperm.xlu0 %142, %v16_v7  }
  0x92   :  { %v21_v8 = vpop.xlane.xlu0 %20 }
  0x93   :  { %v22_v9 = vmax.f32 %v21_v8, 1e-24 }
  0x95   :  { %145 = vrsqrt.f32 %v22_v9 }
  0x9a   :  { %v89_v15 = vpop.permute.xlu0 %88 }
  0x9b   :  { %vm90_vm2 = vcmp.eq.s32.totalorder %v86_v14, %v89_v15 }
  0x9f   :  { %v146_v10 = vpop.eup %145 }
  0xa0   :  { %v24_v11 = vmul.f32 %v146_v10, %v15_v0 }
  0xa2   :  { %v25_v12 = vpack.c.bf16 %v24_v11, %v24_v11 }
  0xa4   :  { %136 = vmatmul.mubr.msk.bf16.vlgmr.msra.gmra.mrb[0].mxu0 %vm18_vm0, %v25_v12 }
 0x177   :  { %v79_v16 = vpop.f32.mrb[0].mxu0 }
 0x178   :  { %v127_v17 = vadd.f32 -12.0, %v79_v16  ;;  %v137_v18 = vpop.f32.mrb[1].mxu0 }
 0x179   :  { %v82_v19 = vpop.f32.mrb[2].mxu0 }
 0x17a   :  { %v138_v20 = vpop.f32.mrb[3].mxu0  ;;  %v92_v21 = vsel %vm90_vm2, %v127_v17, %v79_v16  ;;  %v106_v22 = vsel %vm90_vm2, %v127_v17, 0.0 }
 0x17b   :  { %v94_v23 = vsel %vm93_vm3, %v92_v21, -inf  ;;  %v107_v29 = vsel %vm93_vm3, %v106_v22, 0.0 }
 0x17c   :  { %95 = vmax.xlane.f32.xlu1 %v94_v23 }
 0x209   :  { %v96_v24 = vpop.xlane.xlu1 %95 }
 0x20a   :  { %v97_v25 = vsub.f32 %v92_v21, %v96_v24 }
 0x20c   :  { %v98_v26 = vmul.f32 1.442695, %v97_v25 }
 0x20e   :  { %147 = vpow2.f32 %v98_v26 }
 0x218   :  { %v148_v27 = vpop.eup %147 }
 0x219   :  { %v100_v28 = vsel %vm93_vm3, %v148_v27, 0.0 }
 0x21a   :  { %101 = vadd.xlane.f32.xlu1 %v100_v28 }
 0x21e   :  { %108 = vadd.xlane.f32.xlu1 %v107_v29 }
 0x2a7   :  { %v102_v30 = vpop.xlane.xlu1 %101 }
 0x2a8   :  { %149 = vlog2.f32 %v102_v30 }
 0x2ab   :  { %v109_v34 = vpop.xlane.xlu1 %108 }
 0x2b2   :  { %v150_v31 = vpop.eup %149 }
 0x2b3   :  { %v104_v32 = vmul.f32 0.6931472, %v150_v31 }
 0x2b5   :  { %v105_v33 = vadd.f32 %v104_v32, %v96_v24 }
 0x2b7   :  { %v110_v35 = vsub.f32 %v105_v33, %v109_v34 }
 0x2b9   :  { %119 = vst.msk [vmem:[%s194_s3] sm:$0xff] %vm118_vm4, %v110_v35 }

// kernel: tpu_custom_call.1
= control target key start
LH: loop header
LB: loop body
LE: loop exit
PB: predicated region body
PF: predicated region fallthrough
CT: control target
= control target key end

     0   :  { %vm18_vm0 = vcmask 261120   ;;  %v151_v3 = vmov 0.0   ;;  %vm152_vm1 = vmmov 0   ;;  %v153_v6 = vmov 0   ;;  %s191_s1 = inlined_call_operand.vmem [shape: f32[8,32], index: 1, kind: input, shape index: {}]   ;;  %s192_s2 = inlined_call_operand.vmem [shape: bf16[32,16], index: 2, kind: input, shape index: {}]   ;;  %s193_s0 = inlined_call_operand.vmem [shape: s32[8,1], index: 0, kind: input, shape index: {}]   ;;  %s194_s3 = inlined_call_operand.vmem [shape: f32[8,1], index: 3, kind: output, shape index: {}]  }
   0x1   :  { %v15_v0 = vld [vmem:[%s191_s1] sm:$0xff]  ;;  %131 = vmatprep.subr.bf16.mxu0 %v151_v3  ;;  %135 = vmatprep.mubr.msk.bf16.mxu0 %vm152_vm1, %v151_v3  ;;  %v144_v5 = vld [vmem:[%s192_s2 + $0x8] sm:$0xff]   ;;  %v85_v13 = vlaneseq  ;;  %vm93_vm3 = vcmask 130048   ;;  %vm118_vm4 = vcmask 7168  }
   0x2   :  { %v17_v1 = vmul.f32 %v15_v0, %v15_v0  ;;  %v143_v4 = vld [vmem:[%s192_s2] sm:$0xff]   ;;  %142 = vset.pattern.permute.xlu0 %v153_v6 }
   0x3   :  { %132 = vmatpush3.bf16.msra.mxu0 %v143_v4  ;;  %v16_v7 = vld [vmem:[%s193_s0] sm:$0xff]  ;;  %v86_v14 = vand.u32 127, %v85_v13 }
   0x4   :  { %v19_v2 = vsel %vm18_vm0, %v17_v1, 0.0  ;;  %133 = vmatprep.subr.bf16.mxu0 %v151_v3 }
   0x5   :  { %20 = vadd.xlane.f32.xlu0 %v19_v2 }
   0x7   :  { %134 = vmatpush3.bf16.msra.mxu0 %v144_v5 }
  0x1b   :  { %88 = vperm.xlu0 %142, %v16_v7  }
  0x92   :  { %v21_v8 = vpop.xlane.xlu0 %20 }
  0x93   :  { %v22_v9 = vmax.f32 %v21_v8, 1e-24 }
  0x95   :  { %145 = vrsqrt.f32 %v22_v9 }
  0x9a   :  { %v89_v15 = vpop.permute.xlu0 %88 }
  0x9b   :  { %vm90_vm2 = vcmp.eq.s32.totalorder %v86_v14, %v89_v15 }
  0x9f   :  { %v146_v10 = vpop.eup %145 }
  0xa0   :  { %v24_v11 = vmul.f32 %v146_v10, %v15_v0 }
  0xa2   :  { %v25_v12 = vpack.c.bf16 %v24_v11, %v24_v11 }
  0xa4   :  { %136 = vmatmul.mubr.msk.bf16.vlgmr.msra.gmra.mrb[0].mxu0 %vm18_vm0, %v25_v12 }
 0x177   :  { %v79_v16 = vpop.f32.mrb[0].mxu0 }
 0x178   :  { %v127_v17 = vadd.f32 -12.0, %v79_v16  ;;  %v137_v18 = vpop.f32.mrb[1].mxu0 }
 0x179   :  { %v82_v19 = vpop.f32.mrb[2].mxu0 }
 0x17a   :  { %v138_v20 = vpop.f32.mrb[3].mxu0  ;;  %v92_v21 = vsel %vm90_vm2, %v127_v17, %v79_v16  ;;  %v106_v22 = vsel %vm90_vm2, %v127_v17, 0.0 }
 0x17b   :  { %v94_v23 = vsel %vm93_vm3, %v92_v21, -inf  ;;  %v107_v29 = vsel %vm93_vm3, %v106_v22, 0.0 }
 0x17c   :  { %95 = vmax.xlane.f32.xlu1 %v94_v23 }
 0x209   :  { %v96_v24 = vpop.xlane.xlu1 %95 }
 0x20a   :  { %v97_v25 = vsub.f32 %v92_v21, %v96_v24 }
 0x20c   :  { %v98_v26 = vmul.f32 1.442695, %v97_v25 }
 0x20e   :  { %147 = vpow2.f32 %v98_v26 }
 0x218   :  { %v148_v27 = vpop.eup %147 }
 0x219   :  { %v100_v28 = vsel %vm93_vm3, %v148_v27, 0.0 }
 0x21a   :  { %101 = vadd.xlane.f32.xlu1 %v100_v28 }
 0x21e   :  { %108 = vadd.xlane.f32.xlu1 %v107_v29 }
 0x2a7   :  { %v102_v30 = vpop.xlane.xlu1 %101 }
 0x2a8   :  { %149 = vlog2.f32 %v102_v30 }
 0x2ab   :  { %v109_v34 = vpop.xlane.xlu1 %108 }
 0x2b2   :  { %v150_v31 = vpop.eup %149 }
 0x2b3   :  { %v104_v32 = vmul.f32 0.6931472, %v150_v31 }
 0x2b5   :  { %v105_v33 = vadd.f32 %v104_v32, %v96_v24 }
 0x2b7   :  { %v110_v35 = vsub.f32 %v105_v33, %v109_v34 }
 0x2b9   :  { %119 = vst.msk [vmem:[%s194_s3] sm:$0xff] %vm118_vm4, %v110_v35 }

</bundles_post_ra>
